<compile_context>
chip_gen: v7x
topology: tpu7x:2x2x1
jax: 0.10.0
libtpu: 0.0.40
codegen_flags: <defaults>
</compile_context>

<pallas_src>
import functools

import jax
import jax.numpy as jnp
from jax.experimental import pallas as pl
from jax.experimental.pallas import tpu as pltpu


# ---------------------------------------------------------------------------
# Kernel 1: fused 3x3 conv (im2col matmul) + ReLU + global average pool.
#           grid = (Cout tiles, H*W row tiles); the row-tile axis is the
#           reduction axis (last in the grid, "arbitrary"); the pooled output
#           block stays resident in VMEM across it and is used as the
#           accumulator (init / finalize via pl.when).
# ---------------------------------------------------------------------------
def conv_relu_gap_kernel(p_ref, w_ref, b_ref, out_ref, *, inv_hw):
    # p_ref:   (N, tile_rows, K) bf16 -- im2col patches for one spatial tile
    # w_ref:   (K, tile_cout)    bf16 -- flattened 3x3 conv weights (K = 9*Cin)
    # b_ref:   (1, tile_cout)    f32
    # out_ref: (N, tile_cout)    f32  -- running sum over H*W, scaled at the end
    r = pl.program_id(1)

    @pl.when(r == 0)
    def _():
        out_ref[...] = jnp.zeros_like(out_ref)

    w = w_ref[...]
    b = b_ref[...]
    n_batch = p_ref.shape[0]
    partial_sums = []
    for n in range(n_batch):  # N is tiny and static -> unrolled
        # Single MXU contraction per image: (tile_rows, K) @ (K, tile_cout).
        y = jnp.dot(p_ref[n], w, preferred_element_type=jnp.float32)
        y = jnp.maximum(y + b, 0.0)                       # conv bias + ReLU
        partial_sums.append(jnp.sum(y, axis=0, keepdims=True))   # (1, tile_cout)
    out_ref[...] += jnp.concatenate(partial_sums, axis=0)        # (N, tile_cout)

    @pl.when(r == pl.num_programs(1) - 1)
    def _():
        out_ref[...] = out_ref[...] * inv_hw              # sum -> mean (GAP)


def conv_relu_gap(patches, w_flat, b_conv, *, tile_rows, tile_cout):
    N, HW, K = patches.shape
    Kw, Cout = w_flat.shape
    assert Kw == K
    assert HW % tile_rows == 0 and Cout % tile_cout == 0

    grid = (Cout // tile_cout, HW // tile_rows)

    # VMEM budget: double-buffered patch / weight / bias tiles + resident output.
    tile_bytes = (2 * N * tile_rows * K * patches.dtype.itemsize
                  + 2 * K * tile_cout * w_flat.dtype.itemsize
                  + 2 * tile_cout * 4
                  + 2 * N * tile_cout * 4)
    vmem_limit = int(min(max(2 * tile_bytes + (8 << 20), 16 << 20), 32 << 20))

    kernel = functools.partial(conv_relu_gap_kernel, inv_hw=1.0 / float(HW))
    return pl.pallas_call(
        kernel,
        out_shape=jax.ShapeDtypeStruct((N, Cout), jnp.float32),
        grid=grid,
        in_specs=[
            pl.BlockSpec((N, tile_rows, K), lambda c, r: (0, r, 0)),
            pl.BlockSpec((K, tile_cout), lambda c, r: (0, c)),
            pl.BlockSpec((1, tile_cout), lambda c, r: (0, c)),
        ],
        out_specs=pl.BlockSpec((N, tile_cout), lambda c, r: (0, c)),
        compiler_params=pltpu.CompilerParams(
            dimension_semantics=("parallel", "arbitrary"),
            vmem_limit_bytes=vmem_limit),
    )(patches, w_flat, b_conv)


# ---------------------------------------------------------------------------
# Kernel 2: classifier head on the pooled features:
#           Linear(last_layer, 7) -> softmax(dim=1). Returns (logits, probs),
#           matching FEClassifier.forward. Inputs are only (N, C) -- trivial.
# ---------------------------------------------------------------------------
def head_kernel(pooled_ref, w_ref, b_ref, logits_ref, probs_ref):
    logits = jnp.dot(pooled_ref[...], w_ref[...],
                     preferred_element_type=jnp.float32) + b_ref[...]   # (N, 7)
    m = jnp.max(logits, axis=1, keepdims=True)
    e = jnp.exp(logits - m)
    probs = e / jnp.sum(e, axis=1, keepdims=True)
    logits_ref[...] = logits
    probs_ref[...] = probs


def classifier_head(pooled, w_fc, b_fc):
    N, C = pooled.shape
    ncls = w_fc.shape[1]
    return pl.pallas_call(
        head_kernel,
        out_shape=(jax.ShapeDtypeStruct((N, ncls), jnp.float32),
                   jax.ShapeDtypeStruct((N, ncls), jnp.float32)),
        in_specs=[
            pl.BlockSpec((N, C), lambda: (0, 0)),
            pl.BlockSpec((C, ncls), lambda: (0, 0)),
            pl.BlockSpec((1, ncls), lambda: (0, 0)),
        ],
        out_specs=(pl.BlockSpec((N, ncls), lambda: (0, 0)),
                   pl.BlockSpec((N, ncls), lambda: (0, 0))),
    )(pooled, w_fc, b_fc)


# ---------------------------------------------------------------------------
# Wrapper: FEClassifier.forward  (x NCHW) -> (logits, probs)
# ---------------------------------------------------------------------------
def im2col_3x3(x_nhwc):
    """Build (N, H*W, 9*Cin) im2col patches for a stride-1 'same' 3x3 conv."""
    N, H, W, C = x_nhwc.shape
    xp = jnp.pad(x_nhwc, ((0, 0), (1, 1), (1, 1), (0, 0)))
    cols = []
    for kh in range(3):
        for kw in range(3):
            cols.append(xp[:, kh:kh + H, kw:kw + W, :])
    patches = jnp.concatenate(cols, axis=-1)          # (N, H, W, 9*C)
    return patches.reshape(N, H * W, 9 * C)


def _pick_tile(total, candidates):
    for t in candidates:
        if t <= total and total % t == 0:
            return t
    return total


def fe_classifier_forward(x_nchw, params, *, tile_rows=None, tile_cout=None):
    # NCHW -> NHWC for the TPU kernels.
    x = jnp.transpose(x_nchw, (0, 2, 3, 1)).astype(jnp.float32)
    N, H, W, Cin = x.shape
    Cout = params["w_conv"].shape[3]

    # im2col in the wrapper (input is tiny RGB-like; per the review this is
    # far cheaper than 9 unaligned in-kernel slices), fed to the MXU in bf16.
    patches = im2col_3x3(x).astype(jnp.bfloat16)                    # (N, HW, 9*Cin)
    w_flat = params["w_conv"].reshape(9 * Cin, Cout).astype(jnp.bfloat16)

    if tile_rows is None:
        tile_rows = _pick_tile(H * W, (1024, 512, 256, 128, 64, 32, 16, 8))
    if tile_cout is None:
        tile_cout = _pick_tile(Cout, (256, 128))

    pooled = conv_relu_gap(patches, w_flat, params["b_conv"],
                           tile_rows=tile_rows, tile_cout=tile_cout)  # (N, Cout) f32
    logits, probs = classifier_head(pooled, params["w_fc"], params["b_fc"])
    return logits, probs


def make_params(key, cin, last_layer, num_classes=7):
    k1, k2, k3, k4 = jax.random.split(key, 4)
    scale_conv = 1.0 / jnp.sqrt(9.0 * cin)
    scale_fc = 1.0 / jnp.sqrt(float(last_layer))
    return {
        "w_conv": (jax.random.normal(k1, (3, 3, cin, last_layer), jnp.float32)
                   * scale_conv),
        "b_conv": (jax.random.normal(k2, (1, last_layer), jnp.float32)
                   * scale_conv),
        "w_fc": (jax.random.normal(k3, (last_layer, num_classes), jnp.float32)
                 * scale_fc),
        "b_fc": (jax.random.normal(k4, (1, num_classes), jnp.float32)
                 * scale_fc),
    }


# Pure-JAX (f32) reference for a correctness sanity check.
def _reference(x_nchw, params):
    x = jnp.transpose(x_nchw, (0, 2, 3, 1)).astype(jnp.float32)
    y = jax.lax.conv_general_dilated(
        x, params["w_conv"], window_strides=(1, 1), padding="SAME",
        dimension_numbers=("NHWC", "HWIO", "NHWC"))
    y = jnp.maximum(y + params["b_conv"][0], 0.0)
    pooled = jnp.mean(y, axis=(1, 2))
    logits = pooled @ params["w_fc"] + params["b_fc"][0]
    probs = jax.nn.softmax(logits, axis=1)
    return logits, probs


if __name__ == "__main__":
    # Small shapes: batch=2, channels=4, spatial=16x16 (scaled-down stand-in
    # for 3x224x224 images); last_layer=256 is the scaled-down analog of
    # 2048/1664/1408/1280/768. tile_rows=64 / tile_cout=128 exercise both the
    # Cout ("parallel") grid axis and the H*W reduction ("arbitrary") axis.
    N, CIN, HW = 2, 4, 16
    LAST_LAYER = 256

    key = jax.random.PRNGKey(0)
    kx, kp = jax.random.split(key)
    x = jax.random.normal(kx, (N, CIN, HW, HW), jnp.float32)   # NCHW, like PyTorch
    params = make_params(kp, CIN, LAST_LAYER)

    logits, probs = fe_classifier_forward(x, params, tile_rows=64, tile_cout=128)
    logits = jax.block_until_ready(logits)
    probs = jax.block_until_ready(probs)

    ref_logits, ref_probs = _reference(x, params)
    # bf16 MXU inputs (f32 accumulation) -> loosened tolerances vs the f32 ref.
    assert jnp.allclose(logits, ref_logits, atol=3e-2, rtol=3e-2)
    assert jnp.allclose(probs, ref_probs, atol=1e-2, rtol=1e-2)
    assert jnp.allclose(jnp.sum(probs, axis=1), 1.0, atol=1e-5)

    print("KERNEL_OK")
</pallas_src>

<mosaic_0001>
module attributes {stable_mosaic.version = 11 : i64} {
  func.func @conv_relu_gap_kernel(%arg0: i32, %arg1: i32, %arg2: memref<2x64x36xbf16, #tpu.memory_space<vmem>>, %arg3: memref<36x128xbf16, #tpu.memory_space<vmem>>, %arg4: memref<1x128xf32, #tpu.memory_space<vmem>>, %arg5: memref<2x128xf32, #tpu.memory_space<vmem>>) attributes {dimension_semantics = [#tpu.dimension_semantics<parallel>, #tpu.dimension_semantics<arbitrary>], iteration_bounds = array<i64: 2, 4>, scalar_prefetch = 0 : i64, scratch_operands = 0 : i64, tpu.core_type = #tpu.core_type<tc>, window_params = [{transform_indices = @transform_0, window_bounds = array<i64: 2, 64, 36>}, {transform_indices = @transform_1, window_bounds = array<i64: 36, 128>}, {transform_indices = @transform_2, window_bounds = array<i64: 1, 128>}, {transform_indices = @transform_3, window_bounds = array<i64: 2, 128>}]} {
    %c0_i32 = arith.constant 0 : i32
    %0 = arith.cmpi eq, %arg1, %c0_i32 : i32
    %1 = arith.extui %0 : i1 to i32
    %c0_i32_0 = arith.constant 0 : i32
    %2 = arith.cmpi ne, %1, %c0_i32_0 : i32
    scf.if %2 {
      %cst_19 = arith.constant 0.000000e+00 : f32
      %30 = vector.broadcast %cst_19 : f32 to vector<2x128xf32>
      %c0_20 = arith.constant 0 : index
      %c0_21 = arith.constant 0 : index
      %31 = vector.load %arg5[%c0_20, %c0_21] : memref<2x128xf32, #tpu.memory_space<vmem>>, vector<2x128xf32>
      tpu.vector_store %arg5[%c0_20, %c0_21], %30 {strides = array<i32>} : memref<2x128xf32, #tpu.memory_space<vmem>>, vector<2x128xf32>,
    } else {
    }
    %c0 = arith.constant 0 : index
    %c0_1 = arith.constant 0 : index
    %3 = vector.load %arg3[%c0, %c0_1] : memref<36x128xbf16, #tpu.memory_space<vmem>>, vector<36x128xbf16>
    %c0_2 = arith.constant 0 : index
    %c0_3 = arith.constant 0 : index
    %4 = vector.load %arg4[%c0_2, %c0_3] : memref<1x128xf32, #tpu.memory_space<vmem>>, vector<1x128xf32>
    %c0_4 = arith.constant 0 : index
    %c0_5 = arith.constant 0 : index
    %c0_6 = arith.constant 0 : index
    %5 = vector.load %arg2[%c0_4, %c0_5, %c0_6] : memref<2x64x36xbf16, #tpu.memory_space<vmem>>, vector<1x64x36xbf16>
    %6 = vector.shape_cast %5 : vector<1x64x36xbf16> to vector<64x36xbf16>
    %cst = arith.constant dense<0.000000e+00> : vector<64x128xf32>
    %7 = tpu.matmul %6, %3, %cst {dimension_numbers = #tpu.dot_dimension_numbers<[1], [0], [0], [1], [0, 0, 1, 1], [], []>} : vector<64x36xbf16>, vector<36x128xbf16>, vector<64x128xf32> -> vector<64x128xf32>
    %8 = vector.broadcast %4 : vector<1x128xf32> to vector<64x128xf32>
    %9 = arith.addf %7, %8 : vector<64x128xf32>
    %cst_7 = arith.constant 0.000000e+00 : f32
    %10 = vector.broadcast %cst_7 : f32 to vector<64x128xf32>
    %11 = arith.maximumf %9, %10 : vector<64x128xf32>
    %cst_8 = arith.constant dense<0.000000e+00> : vector<128xf32>
    %12 = vector.multi_reduction <add>, %11, %cst_8 [0] : vector<64x128xf32> to vector<128xf32>
    %13 = vector.shape_cast %12 : vector<128xf32> to vector<1x128xf32>
    %c1 = arith.constant 1 : index
    %c0_9 = arith.constant 0 : index
    %c0_10 = arith.constant 0 : index
    %14 = vector.load %arg2[%c1, %c0_9, %c0_10] : memref<2x64x36xbf16, #tpu.memory_space<vmem>>, vector<1x64x36xbf16>
    %15 = vector.shape_cast %14 : vector<1x64x36xbf16> to vector<64x36xbf16>
    %cst_11 = arith.constant dense<0.000000e+00> : vector<64x128xf32>
    %16 = tpu.matmul %15, %3, %cst_11 {dimension_numbers = #tpu.dot_dimension_numbers<[1], [0], [0], [1], [0, 0, 1, 1], [], []>} : vector<64x36xbf16>, vector<36x128xbf16>, vector<64x128xf32> -> vector<64x128xf32>
    %17 = vector.broadcast %4 : vector<1x128xf32> to vector<64x128xf32>
    %18 = arith.addf %16, %17 : vector<64x128xf32>
    %cst_12 = arith.constant 0.000000e+00 : f32
    %19 = vector.broadcast %cst_12 : f32 to vector<64x128xf32>
    %20 = arith.maximumf %18, %19 : vector<64x128xf32>
    %cst_13 = arith.constant dense<0.000000e+00> : vector<128xf32>
    %21 = vector.multi_reduction <add>, %20, %cst_13 [0] : vector<64x128xf32> to vector<128xf32>
    %22 = vector.shape_cast %21 : vector<128xf32> to vector<1x128xf32>
    %c0_14 = arith.constant 0 : index
    %c0_15 = arith.constant 0 : index
    %23 = vector.load %arg5[%c0_14, %c0_15] : memref<2x128xf32, #tpu.memory_space<vmem>>, vector<2x128xf32>
    %24 = tpu.concatenate %13, %22 in 0 : vector<1x128xf32>, vector<1x128xf32> -> vector<2x128xf32>
    %25 = arith.addf %23, %24 : vector<2x128xf32>
    %c0_16 = arith.constant 0 : index
    %c0_17 = arith.constant 0 : index
    %26 = vector.load %arg5[%c0_16, %c0_17] : memref<2x128xf32, #tpu.memory_space<vmem>>, vector<2x128xf32>
    tpu.vector_store %arg5[%c0_16, %c0_17], %25 {strides = array<i32>} : memref<2x128xf32, #tpu.memory_space<vmem>>, vector<2x128xf32>,
    %c3_i32 = arith.constant 3 : i32
    %27 = arith.cmpi eq, %arg1, %c3_i32 : i32
    %28 = arith.extui %27 : i1 to i32
    %c0_i32_18 = arith.constant 0 : i32
    %29 = arith.cmpi ne, %28, %c0_i32_18 : i32
    scf.if %29 {
      %c0_19 = arith.constant 0 : index
      %c0_20 = arith.constant 0 : index
      %30 = vector.load %arg5[%c0_19, %c0_20] : memref<2x128xf32, #tpu.memory_space<vmem>>, vector<2x128xf32>
      %cst_21 = arith.constant 3.906250e-03 : f32
      %31 = vector.broadcast %cst_21 : f32 to vector<2x128xf32>
      %32 = arith.mulf %30, %31 : vector<2x128xf32>
      %c0_22 = arith.constant 0 : index
      %c0_23 = arith.constant 0 : index
      %33 = vector.load %arg5[%c0_22, %c0_23] : memref<2x128xf32, #tpu.memory_space<vmem>>, vector<2x128xf32>
      tpu.vector_store %arg5[%c0_22, %c0_23], %32 {strides = array<i32>} : memref<2x128xf32, #tpu.memory_space<vmem>>, vector<2x128xf32>,
    } else {
    }
    return
  }
  func.func @transform_0(%arg0: i32, %arg1: i32) -> (i32, i32, i32) {
    %c0_i32 = arith.constant 0 : i32
    %c0_i32_0 = arith.constant 0 : i32
    %c0_i32_1 = arith.constant 0 : i32
    return %c0_i32, %arg1, %c0_i32_0 : i32, i32, i32
  }
  func.func @transform_1(%arg0: i32, %arg1: i32) -> (i32, i32) {
    %c0_i32 = arith.constant 0 : i32
    %c0_i32_0 = arith.constant 0 : i32
    return %c0_i32, %arg0 : i32, i32
  }
  func.func @transform_2(%arg0: i32, %arg1: i32) -> (i32, i32) {
    %c0_i32 = arith.constant 0 : i32
    %c0_i32_0 = arith.constant 0 : i32
    return %c0_i32, %arg0 : i32, i32
  }
  func.func @transform_3(%arg0: i32, %arg1: i32) -> (i32, i32) {
    %c0_i32 = arith.constant 0 : i32
    %c0_i32_0 = arith.constant 0 : i32
    return %c0_i32, %arg0 : i32, i32
  }
}

</mosaic_0001>

<bundles_post_ra>
// kernel: tpu_custom_call.1
= control target key start
LH: loop header
LB: loop body
LE: loop exit
PB: predicated region body
PF: predicated region fallthrough
CT: control target
= control target key end

     0   :  { %s1336_s0 = inlined_call_operand.vmem [shape: bf16[2,256,36], index: 0, kind: input, shape index: {}]   ;;  %s1337_s1 = inlined_call_operand.vmem [shape: bf16[36,256], index: 1, kind: input, shape index: {}]   ;;  %s1338_s2 = inlined_call_operand.vmem [shape: f32[1,256], index: 2, kind: input, shape index: {}]   ;;  %s1339_s3 = inlined_call_operand.hbm [shape: f32[2,256], index: 3, kind: output, shape index: {}]  }
   0x1   :  { %1340 = sst [smem:[#allocation7_spill]] %s1336_s0 }
   0x2   :  { %8 = vsyncpa [#allocation5], 0 }
   0x3   :  { %10 = vsyncpa [#allocation5 + $0x1], 0  ;;  %s1120_s12 = smov 0   ;;  %s1122_s13 = smov 0  }
   0x4   :  { %s1124_s14 = smov 0   ;;  %s1126_s15 = smov 0  }
   0x5   :  { %s1128_s16 = smov 0   ;;  %s1130_s17 = smov 0  }
   0x6   :  { %s1132_s18 = smov 0   ;;  %s1134_s19 = smov 0  }
   0x7   :  { %s1136_s20 = smov 0   ;;  %s1138_s21 = smov 0  }
   0x8 LB: > { %s795_s22 = sadd.s32 4294967295, %s1096_s21   ;;  %s796_s23 = sadd.s32 4294967294, %s1096_s21   ;;  %s1096_s21 = sphi %s1138_s21, %s16_s21   ;;  %s1092_s20 = sphi %s1136_s20, %s1354_s20   ;;  %s1088_s19 = sphi %s1134_s19, %s1353_s19   ;;  %s1084_s18 = sphi %s1132_s18, %s1352_s18   ;;  %s1080_s17 = sphi %s1130_s17, %s1351_s17   ;;  %s1076_s16 = sphi %s1128_s16, %s1350_s16   ;;  %s1072_s15 = sphi %s1126_s15, %s1349_s15   ;;  %s1068_s14 = sphi %s1124_s14, %s1348_s14   ;;  %s1064_s13 = sphi %s1122_s13, %s1347_s13   ;;  %s1060_s12 = sphi %s1120_s12, %s1346_s12  }
   0x9   : > { %s25_s24 = sadd.s32 1, %s1088_s19  ;;  %s28_s25 = sadd.s32 1, %s1092_s20 }
   0xa   : > { %p26_p0 = scmp.ge.s32.totalorder %s25_s24, 4  ;;  %s35_s26 = sadd.s32 1, %s1076_s16 }
   0xb   : > { %p42_p1 = scmp.ne.s32.totalorder %s1076_s16, %s1072_s15  ;;  %p43_p2 = scmp.eq.s32.totalorder %s1096_s21, 0 }
   0xc   : > { %s1356_s24 = smov (%p26_p0, %s25_s24), 0  ;;  %s1358_s25 = smov (!%p26_p0, %s28_s25), %s1092_s20 }
   0xd   : > { %s32_s27 = ssub.s32 %s1088_s19, %s1356_s24  ;;  %p1183_p3 = por %p43_p2, %p42_p1 }
   0xe   : > { %p30_p4 = scmp.ge.s32.totalorder %s1358_s25, 2  ;;  %p33_p5 = scmp.eq.s32.totalorder %s32_s27, 0 }
   0xf   : > { %s61_s29 = sadd.s32 1, %s1068_s14  ;;  %p68_p6 = scmp.ne.s32.totalorder %s1068_s14, %s1064_s13 }
  0x10   : > { %s1360_s25 = smov (%p30_p4, %s1358_s25), 0  ;;  %p124_p9 = scmp.eq.s32.totalorder %s795_s22, 7 }
  0x11   : > { %s1193_s30 = scalar_select %p33_p5, %s1076_s16, %s35_s26  }
  0x12   : > { %s58_s4 = ssub.s32 %s1092_s20, %s1360_s25  ;;  %p1197_p7 = por %p68_p6, %p43_p2 }
  0x13   : > { %p59_p8 = scmp.eq.s32.totalorder %s58_s4, 0  ;;  %p129_p10 = scmp.ne.s32.totalorder %s1064_s13, %s1060_s12 }
  0x14   : > { %p130_p11 = scmp.eq.s32.totalorder %s796_s23, 7  ;;  %p1206_p12 = por %p124_p9, %p68_p6 }
  0x15   : > { %s1204_s6 = scalar_select %p59_p8, %s1068_s14, %s61_s29  }
  0x16   : > { %p1210_p13 = por %p130_p11, %p129_p10  ;;  %p798_p0 = scmp.ge.s32.totalorder %s1096_s21, 8 }
  0x18   : > { %146 = sbr.rel (%p798_p0) target bundleno = 53 (0x35), region = 16 }
  0x1f   : > { %149 = sbr.rel (!%p1183_p3) target bundleno = 45 (0x2d), region = 20  ;;  %s151_s9 = sand.u32 (%p1183_p3), 1, %s1076_s16  }
  0x20   : > { %s840_s10 = sshll.u32 (%p1183_p3), %s1088_s19, 5  ;;  %s799_s11 = sshll.u32 (%p1183_p3), %s151_s9, 6 }
  0x21   : > { %s1345_s0 = sld [smem:[#allocation7_spill]] (%p1183_p3)  ;;  %s153_s27 = scalar_lea.vmem (%p1183_p3), [#allocation2], %s799_s11 }
  0x27   : > { %s156_s26 = scalar_lea.vmem %s1345_s0, %s840_s10 }
  0x28   : > { %v172_v0 = vld [vmem:[%s156_s26] sm:$0xff]   ;;  %v176_v1 = vld [vmem:[%s156_s26 + $0x8] sm:$0xff]   ;;  %v180_v2 = vld [vmem:[%s156_s26 + $0x10] sm:$0xff]  }
  0x29   : > { %173 = vst [vmem:[%s153_s27] sm:$0xff] %v172_v0   ;;  %177 = vst [vmem:[%s153_s27 + $0x8] sm:$0xff] %v176_v1   ;;  %v184_v3 = vld [vmem:[%s156_s26 + $0x18] sm:$0xff]   ;;  %v188_v4 = vld [vmem:[%s156_s26 + $0x80] sm:$0xff]  }
  0x2a   : > { %181 = vst [vmem:[%s153_s27 + $0x10] sm:$0xff] %v180_v2   ;;  %v192_v5 = vld [vmem:[%s156_s26 + $0x88] sm:$0xff]   ;;  %185 = vst [vmem:[%s153_s27 + $0x18] sm:$0xff] %v184_v3   ;;  %v196_v6 = vld [vmem:[%s156_s26 + $0x90] sm:$0xff]  }
  0x2b   : > { %189 = vst [vmem:[%s153_s27 + $0x20] sm:$0xff] %v188_v4   ;;  %193 = vst [vmem:[%s153_s27 + $0x28] sm:$0xff] %v192_v5   ;;  %v200_v7 = vld [vmem:[%s156_s26 + $0x98] sm:$0xff]  }
  0x2c   : > { %197 = vst [vmem:[%s153_s27 + $0x30] sm:$0xff] %v196_v6   ;;  %201 = vst [vmem:[%s153_s27 + $0x38] sm:$0xff] %v200_v7  }
  0x2d PF: > { %258 = sbr.rel (!%p1197_p7) target bundleno = 53 (0x35), region = 61  ;;  %s260_s28 = sand.u32 (%p1197_p7), 1, %s1068_s14  }
  0x2e   : > { %s802_s29 = sshll.u32 (%p1197_p7), %s1092_s20, 2  ;;  %s885_s4 = smul.u32 (%p1197_p7), 20, %s260_s28 }
  0x2f   : > { %s264_s11 = scalar_lea.vmem (%p1197_p7), %s1337_s1, %s802_s29 }
  0x30   : > { %v280_v8 = vld [vmem:[%s264_s11] sm:$0xf] (%p1197_p7)  ;;  %v282_v9 = vld [vmem:[%s264_s11 + $0x8] sm:$0xf] (%p1197_p7)  ;;  %v284_v10 = vld [vmem:[%s264_s11 + $0x10] sm:$0xf] (%p1197_p7) }
  0x31   : > { %v286_v11 = vld [vmem:[%s264_s11 + $0x18] sm:$0xf] (%p1197_p7)  ;;  %v288_v12 = vld [vmem:[%s264_s11 + $0x20] sm:$0xf] (%p1197_p7)  ;;  %s262_s22 = scalar_lea.vmem (%p1197_p7), [#allocation3], %s885_s4 }
  0x32   : > { %281 = vst [vmem:[%s262_s22] sm:$0xf] (%p1197_p7), %v280_v8  ;;  %283 = vst [vmem:[%s262_s22 + $0x4] sm:$0xf] (%p1197_p7), %v282_v9 }
  0x33   : > { %285 = vst [vmem:[%s262_s22 + $0x8] sm:$0xf] (%p1197_p7), %v284_v10  ;;  %287 = vst [vmem:[%s262_s22 + $0xc] sm:$0xf] (%p1197_p7), %v286_v11 }
  0x34   : > { %289 = vst [vmem:[%s262_s22 + $0x10] sm:$0xf] %v288_v12 }
  0x35 PF: > { %p803_p1 = scmp.ge.s32.totalorder %s1096_s21, 1  ;;  %p327_p2 = scmp.lt.s32.totalorder %s1096_s21, 9 }
  0x37   : > { %p328_p3 = pnand %p803_p1, %p327_p2 }
  0x38   : > { %s334_s5 = sand.u32 (!%p328_p3), 1, %s1072_s15   ;;  %s1233_s23 = sand.u32 (!%p328_p3), 1, %s1064_s13  }
  0x39   : > { %331 = sbr.rel (%p328_p3) target bundleno = 369 (0x171), region = 106  ;;  %s804_s26 = sshll.u32 (!%p328_p3), %s334_s5, 6 }
  0x3a   : > { %s886_s27 = smul.u32 (!%p328_p3), 20, %s1233_s23  ;;  %s805_s28 = sshll.u32 (!%p328_p3), %s1233_s23, 1 }
  0x3b   : > { %p372_p4 = scmp.lt.s32.totalorder (!%p328_p3), %s1084_s18, 1  ;;  %s1245_s11 = scalar_lea.vmem (!%p328_p3), [#allocation2], %s804_s26 }
  0x3c   : > { %s343_s22 = scalar_lea.vmem (!%p328_p3), [#allocation3], %s886_s27  ;;  %s1247_s0 = scalar_lea.vmem (!%p328_p3), [#allocation4], %s805_s28 }
  0x3d   : > { %p806_p5 = scmp.ne.s32.totalorder (!%p328_p3), %s1080_s17, 0 }
  0x40   : > { %s1239_s29 = scalar_select %p372_p4, %s1084_s18, 1 }
  0x41   : > { %379 = sbr.rel (%p806_p5) target bundleno = 72 (0x48), region = 118  ;;  %v1098_v13 = vmov (!%p806_p5), 0.0  }
  0x42   : > { %s374_s10 = scalar_lea.vmem %s1338_s2, %s1239_s29  ;;  %380 = vst [vmem:[%s1247_s0] sm:$0x3] (!%p806_p5), %v1098_v13 }
  0x48 PF: > { %v975_v14 = vld [vmem:[%s343_s22] sm:$0xff]   ;;  %v976_v15 = vld [vmem:[%s343_s22 + $0x8] sm:$0xff]   ;;  %vm436_vm0 = vcmask 293888   ;;  %v977_v16 = vld [vmem:[%s343_s22 + $0x10] ss:$0 sps:$4 sm:$0x33]  }
  0x49   : > { %855 = vmatprep.subr.bf16.mxu0 %v975_v14  ;;  %869 = vmatprep.subr.bf16.mxu1 %v975_v14  ;;  %v978_v17 = vld [vmem:[%s1245_s11] sm:$0xff]   ;;  %vm449_vm1 = vcmask 1041408   ;;  %v980_v20 = vld [vmem:[%s1245_s11 + $0x8] sm:$0xff]   ;;  %v982_v22 = vld [vmem:[%s1245_s11 + $0x10] sm:$0xff]   ;;  %vm667_vm2 = vcmask 1040384   ;;  %p835_p6 = scmp.ne.s32.totalorder %s1080_s17, 3 }
  0x4a   : > { %856 = vmatpush3.bf16.msra.mxu0 %v975_v14  ;;  %870 = vmatpush3.bf16.msra.mxu1 %v975_v14  ;;  %v979_v18 = vld [vmem:[%s1245_s11 + $0x20] sm:$0xff]   ;;  %v451_v19 = vsel %vm449_vm1, %v977_v16, 0  ;;  %v981_v21 = vld [vmem:[%s1245_s11 + $0x28] sm:$0xff]   ;;  %v983_v23 = vld [vmem:[%s1245_s11 + $0x30] sm:$0xff]  }
  0x4b   : > { %857 = vmatprep.subr.bf16.mxu0 %v976_v15  ;;  %871 = vmatprep.subr.bf16.mxu1 %v976_v15  ;;  %v984_v24 = vld [vmem:[%s1245_s11 + $0x18] sm:$0xff]   ;;  %v807_v26 = vld [vmem:[%s374_s10] ss:$0 sm:$0xff] }
  0x4c   : > { %861 = vmatprep.mubr.msk.bf16.mxu0 %vm436_vm0, %v978_v17  ;;  %875 = vmatprep.mubr.msk.bf16.mxu1 %vm436_vm0, %v979_v18  ;;  %v985_v25 = vld [vmem:[%s1245_s11 + $0x38] sm:$0xff]  }
  0x4e   : > { %858 = vmatpush3.bf16.msra.mxu0 %v976_v15  ;;  %872 = vmatpush3.bf16.msra.mxu1 %v976_v15 }
  0x4f   : > { %883 = vmatprep.subr.msk.bf16.mxu0 %vm449_vm1, %v977_v16  ;;  %884 = vmatprep.subr.msk.bf16.mxu1 %vm449_vm1, %v977_v16 }
  0x52   : > { %860 = vmatpush3.bf16.msra.mxu0 %v451_v19  ;;  %874 = vmatpush3.bf16.msra.mxu1 %v451_v19 }
  0x55   : > { %862 = vmatmul.mubr.msk.bf16.vlgmr.msra.gmra.mrb[0].mxu0 %vm436_vm0, %v980_v20  ;;  %876 = vmatmul.mubr.msk.bf16.vlgmr.msra.gmra.mrb[0].mxu1 %vm436_vm0, %v981_v21 }
  0x56   : > { %865 = vmatprep.mubr.msk.bf16.mxu0 %vm436_vm0, %v982_v22  ;;  %879 = vmatprep.mubr.msk.bf16.mxu1 %vm436_vm0, %v983_v23 }
  0x5d   : > { %866 = vmatmul.mubr.msk.bf16.gmra.mrb[4].mxu0 %vm436_vm0, %v984_v24  ;;  %880 = vmatmul.mubr.msk.bf16.gmra.mrb[4].mxu1 %vm436_vm0, %v985_v25 }
 0x128   : > { %v863_v27 = vpop.f32.mrb[0].mxu0  ;;  %v877_v28 = vpop.f32.mrb[0].mxu1 }
 0x129   : > { %v487_v29 = vpop.f32.mrb[1].mxu0  ;;  %v614_v30 = vpop.f32.mrb[1].mxu1  ;;  %v496_v37 = vadd.f32 %v863_v27, %v807_v26  ;;  %v623_v38 = vadd.f32 %v877_v28, %v807_v26 }
 0x12a   : > { %v488_v31 = vadd.f32 %v807_v26, %v487_v29  ;;  %v615_v32 = vadd.f32 %v807_v26, %v614_v30  ;;  %v864_v33 = vpop.f32.mrb[2].mxu0  ;;  %v878_v34 = vpop.f32.mrb[2].mxu1 }
 0x12b   : > { %v490_v35 = vpop.f32.mrb[3].mxu0  ;;  %v617_v36 = vpop.f32.mrb[3].mxu1  ;;  %v499_v41 = vadd.f32 %v864_v33, %v807_v26  ;;  %v626_v42 = vadd.f32 %v878_v34, %v807_v26  ;;  %v520_v47 = vmax.f32 %v496_v37, 0.0  ;;  %v647_v48 = vmax.f32 %v623_v38, 0.0  ;;  %v666_v37 = vld [vmem:[%s1247_s0] sm:$0x3] }
 0x12c   : > { %v491_v39 = vadd.f32 %v807_v26, %v490_v35  ;;  %v618_v40 = vadd.f32 %v807_v26, %v617_v36  ;;  %v518_v43 = vmax.f32 %v488_v31, 0.0  ;;  %v645_v44 = vmax.f32 %v615_v32, 0.0 }
 0x12d   : > { %v521_v53 = vmax.f32 %v499_v41, 0.0  ;;  %v648_v54 = vmax.f32 %v626_v42, 0.0 }
 0x12e   : > { %v519_v45 = vmax.f32 %v491_v39, 0.0  ;;  %v646_v46 = vmax.f32 %v618_v40, 0.0 }
 0x130   : > { %v526_v49 = vadd.f32 %v519_v45, %v518_v43  ;;  %v653_v50 = vadd.f32 %v646_v46, %v645_v44  ;;  %v867_v51 = vpop.f32.mrb[4].mxu0  ;;  %v881_v52 = vpop.f32.mrb[4].mxu1 }
 0x131   : > { %v503_v55 = vpop.f32.mrb[5].mxu0  ;;  %v630_v56 = vpop.f32.mrb[5].mxu1  ;;  %v512_v5 = vadd.f32 %v867_v51, %v807_v26  ;;  %v639_v6 = vadd.f32 %v881_v52, %v807_v26 }
 0x132   : > { %v527_v57 = vadd.f32 %v526_v49, %v520_v47  ;;  %v654_v58 = vadd.f32 %v653_v50, %v647_v48  ;;  %v504_v59 = vadd.f32 %v807_v26, %v503_v55  ;;  %v631_v60 = vadd.f32 %v807_v26, %v630_v56  ;;  %v868_v61 = vpop.f32.mrb[6].mxu0  ;;  %v882_v62 = vpop.f32.mrb[6].mxu1 }
 0x133   : > { %v506_v63 = vpop.f32.mrb[7].mxu0  ;;  %v633_v0 = vpop.f32.mrb[7].mxu1  ;;  %v515_v11 = vadd.f32 %v868_v61, %v807_v26  ;;  %v642_v12 = vadd.f32 %v882_v62, %v807_v26  ;;  %v524_v15 = vmax.f32 %v512_v5, 0.0  ;;  %v651_v16 = vmax.f32 %v639_v6, 0.0 }
 0x134   : > { %v522_v1 = vmax.f32 %v504_v59, 0.0  ;;  %v528_v2 = vadd.f32 %v527_v57, %v521_v53  ;;  %v649_v3 = vmax.f32 %v631_v60, 0.0  ;;  %v655_v4 = vadd.f32 %v654_v58, %v648_v54 }
 0x135   : > { %v507_v7 = vadd.f32 %v807_v26, %v506_v63  ;;  %v634_v8 = vadd.f32 %v807_v26, %v633_v0  ;;  %v525_v19 = vmax.f32 %v515_v11, 0.0  ;;  %v652_v20 = vmax.f32 %v642_v12, 0.0 }
 0x136   : > { %v529_v9 = vadd.f32 %v528_v2, %v522_v1  ;;  %v656_v10 = vadd.f32 %v655_v4, %v649_v3 }
 0x137   : > { %v523_v13 = vmax.f32 %v507_v7, 0.0  ;;  %v650_v14 = vmax.f32 %v634_v8, 0.0 }
 0x139   : > { %v530_v17 = vadd.f32 %v529_v9, %v523_v13  ;;  %v657_v18 = vadd.f32 %v656_v10, %v650_v14 }
 0x13b   : > { %v531_v21 = vadd.f32 %v530_v17, %v524_v15  ;;  %v658_v22 = vadd.f32 %v657_v18, %v651_v16 }
 0x13d   : > { %v532_v23 = vadd.f32 %v531_v21, %v525_v19  ;;  %v659_v24 = vadd.f32 %v658_v22, %v652_v20 }
 0x13f   : > { %v533_v25 = vrot.slane %v532_v23, 4  ;;  %v660_v27 = vrot.slane %v659_v24, 4 }
 0x141   : > { %v534_v28 = vadd.f32 %v533_v25, %v532_v23  ;;  %v661_v29 = vadd.f32 %v660_v27, %v659_v24 }
 0x143   : > { %v535_v30 = vrot.slane %v534_v28, 2  ;;  %v662_v26 = vrot.slane %v661_v29, 2 }
 0x145   : > { %v536_v31 = vadd.f32 %v535_v30, %v534_v28  ;;  %v663_v32 = vadd.f32 %v662_v26, %v661_v29 }
 0x147   : > { %v537_v33 = vrot.slane %v536_v31, 1  ;;  %v664_v34 = vrot.slane %v663_v32, 1 }
 0x148   : > { %674 = sbr.rel (%p835_p6) target bundleno = 345 (0x159), region = 122 }
 0x149   : > { %v538_v35 = vadd.f32 %v537_v33, %v536_v31  ;;  %v665_v36 = vadd.f32 %v664_v34, %v663_v32 }
 0x14b   : > { %v668_v38 = vsel %vm667_vm2, %v538_v35, %v665_v36 }
 0x14c   : > { %v669_v39 = vadd.f32 %v668_v38, %v666_v37 }
 0x14e   : > { %670 = vst [vmem:[%s1247_s0] sm:$0x3] %v669_v39 }
 0x155   : > { %v675_v40 = vld [vmem:[%s1247_s0] sm:$0x3] }
 0x156   : > { %v676_v41 = vmul.f32 0.00390625, %v675_v40 }
 0x158   : > { %677 = vst [vmem:[%s1247_s0] sm:$0x3] %v676_v41 }
 0x159 PF: > { %s837_s26 = sshll.u32 %s1084_s18, 5  ;;  %s692_s4 = sshll.u32 %s1247_s0, 4  ;;  %s693_s4 = int_to_ptr.vmem [resolvable:$true] %s692_s4 }
 0x15a   : > { %s1281_s29 = scalar_lea.hbm %s1339_s3, %s837_s26  ;;  %s679_s17 = scalar_lea.sflag [#allocation5], %s1233_s23 }
 0x15b   : > { %s986_s9 = scalar_lea.vmem %s693_s4, 32  ;;  %s1099_s10 = smov [#allocation4]  }
 0x15c   : > { %p987_p7 = scmp.ne.s32.totalorder %s693_s4, %s986_s9  ;;  %s990_s11 = sshll.u32 %s1099_s10, 4  ;;  %s991_s11 = int_to_ptr.vmem [resolvable:$false] %s990_s11 }
 0x15d   : > { %s992_s22 = scalar_lea.vmem %s991_s11, 64  ;;  %p993_p10 = scmp.lt.s32.totalorder %s693_s4, %s991_s11 }
 0x15e   : > { %p988_p8 = pnand %p987_p7, %p1206_p12  ;;  %p994_p11 = scmp.lt.s32.totalorder %s992_s22, %s986_s9 }
 0x160   : > { %p989_p9 = pneg %p988_p8  ;;  %p995_p0 = por %p994_p11, %p993_p10 }
 0x162   : > { %p996_p1 = pnand %p995_p0, %p989_p9 }
 0x164   : > { %999 = shalt.err (!%p996_p1)
}
 0x165   : > { %s1000_s0 = scalar_lea.hbm %s1281_s29, 32  ;;  %s1004_s15 = scalar_lea.hbm %s1339_s3, 64 }
 0x166   : > { %p1001_p2 = scmp.ne.s32.totalorder %s1281_s29, %s1000_s0  ;;  %p1005_p5 = scmp.lt.u32.totalorder %s1281_s29, %s1339_s3 }
 0x167   : > { %p1006_p6 = scmp.lt.u32.totalorder %s1004_s15, %s1000_s0  ;;  %p1008_p8 = scmp.lt.u32.totalorder %s1000_s0, %s1281_s29 }
 0x168   : > { %p1002_p3 = pnand %p1001_p2, %p1206_p12 }
 0x169   : > { %p1007_p7 = por %p1006_p6, %p1005_p5 }
 0x16a   : > { %p1003_p4 = pneg %p1002_p3 }
 0x16b   : > { %p1009_p9 = por %p1008_p8, %p1007_p7 }
 0x16d   : > { %p1010_p10 = pnand %p1009_p9, %p1003_p4 }
 0x16f   : > { %1013 = shalt.err (!%p1010_p10)
}
 0x170   : > { %887 = dma.vmem_to_hbm [thread:$0]  (%p1206_p12), %s693_s4, 32, %s1281_s29, %s679_s17  }
 0x171 PF: > { %p893_p11 = scmp.ge.s32.totalorder %s1096_s21, 2  ;;  %s704_s27 = sand.u32 1, %s1060_s12  }
 0x172   : > { %s705_s28 = scalar_lea.sflag [#allocation5], %s704_s27 }
 0x173   : > { %p890_p0 = pnand %p893_p11, %p1210_p13 }
 0x175   : > { %1055 = dma.done.wait (!%p890_p0), %s705_s28, 32  }
 0x176   : > { %1057 = vsyncadd (!%p890_p0), %s705_s28, 4294967264  ;;  %s16_s21 = sadd.s32 1, %s1096_s21   ;;  %s1346_s12 = smov %s1064_s13 }
 0x177   : > { %p13_p1 = scmp.ge.s32.totalorder %s16_s21, 10   ;;  %s1347_s13 = smov %s1068_s14 }
 0x178   : > { %s1348_s14 = smov %s1204_s6  ;;  %s1349_s15 = smov %s1076_s16 }
 0x179   : > { %s1350_s16 = smov %s1193_s30  ;;  %s1351_s17 = smov %s1088_s19 }
 0x17a   : > { %s1352_s18 = smov %s1092_s20  ;;  %s1353_s19 = smov %s1356_s24 }
 0x17b   : > { %s1354_s20 = smov %s1360_s25  ;;  %15 = sbr.rel (!%p13_p1) target bundleno = 8 (0x8), region = 174 }
 0x182   :  { %710 = vsyncpa [#allocation5], 1 }
 0x183   :  { %712 = vsyncpa [#allocation5 + $0x1], 1 }

</bundles_post_ra>
